<compile_context>
chip_gen: v6e
topology: v6e:2x2x1
jax: 0.10.0
libtpu: 0.0.40
codegen_flags: <defaults>
</compile_context>

<pallas_src>
import functools

import jax
import jax.numpy as jnp
from jax.experimental import pallas as pl
from jax.experimental.pallas import tpu as pltpu


_COMPUTE_DTYPE = jnp.bfloat16          # matmul operand dtype (f32 MXU accumulation)


def _round_up(x, m):
    return ((x + m - 1) // m) * m


def _vmem_limit_bytes():
    """Generation-aware scoped-VMEM limit (v5e/v6e: 128 MiB, v7x: 64 MiB physical)."""
    cap = 64 * 1024 * 1024
    try:
        cap = int(getattr(pltpu.get_tpu_info(), "vmem_capacity_bytes", cap))
    except Exception:
        pass
    return max(32 * 1024 * 1024, min(cap * 3 // 4, 100 * 1024 * 1024))


def _pick_tile(dim, pref, align):
    """Largest tile <= pref that divides dim and is a multiple of align, else full dim."""
    if dim <= pref:
        return dim
    t = (pref // align) * align
    while t >= align:
        if dim % t == 0:
            return t
        t -= align
    return dim


def _pick_head_tile(num_heads, head_dim, tl, s, budget_bytes):
    """Head-group size: target a lane-dense output block (HT*Dh >= 128) while keeping the
    (HT, TL, S) f32 softmax intermediates within a VMEM budget."""
    best = 1
    for ht in range(1, num_heads + 1):
        if num_heads % ht:
            continue
        if ht > 1 and 4 * ht * tl * s * 4 > budget_bytes:
            break
        best = ht
        if ht * head_dim >= 128:
            break
    return best


# ----------------------------------------------------------------------------
# Tiled linear:  y = x @ w.T + b   (torch F.linear semantics)
# ----------------------------------------------------------------------------
def _matmul_bias_kernel(x_ref, w_ref, b_ref, o_ref, acc_ref):
    k = pl.program_id(2)

    @pl.when(k == 0)
    def _():
        acc_ref[...] = jnp.zeros_like(acc_ref)

    # x (tm, tk) bf16, w (tk, tn) bf16 (pre-transposed in the wrapper) -> MXU, f32 acc
    acc_ref[...] += jnp.dot(x_ref[...], w_ref[...], preferred_element_type=jnp.float32)

    @pl.when(k == pl.num_programs(2) - 1)
    def _():
        o_ref[...] = (acc_ref[...] + b_ref[...]).astype(o_ref.dtype)


def pallas_linear(x, weight, bias, *, out_dtype=jnp.float32, tm=512, tn=512, tk=512):
    """x: (M, K), weight: (Nout, K) [torch layout], bias: (Nout,) -> (M, Nout) out_dtype."""
    M, K = x.shape
    Nout = weight.shape[0]

    x_c = x.astype(_COMPUTE_DTYPE)
    w_t = weight.T.astype(_COMPUTE_DTYPE)                 # (K, Nout), trace-time transpose
    b2 = bias.reshape(1, Nout).astype(jnp.float32)

    # Row tile aligned to 16 (bf16 packs 2 rows/sublane); pad M to a tile multiple
    # instead of silently falling back to one huge full-dimension tile.
    tm = min(tm, _round_up(M, 16))
    Mp = _round_up(M, tm)
    if Mp != M:
        x_c = jnp.pad(x_c, ((0, Mp - M), (0, 0)))
    tn = _pick_tile(Nout, tn, 128)
    tk = _pick_tile(K, tk, 128)
    # TODO(synk): pad Nout / K as well if a model ever has awkward (non-divisible) embed dims.
    grid = (Mp // tm, Nout // tn, K // tk)

    flops = 2 * Mp * Nout * K
    bytes_accessed = (2 * (Mp * K + K * Nout) + 4 * Nout
                      + Mp * Nout * jnp.dtype(out_dtype).itemsize)

    out = pl.pallas_call(
        _matmul_bias_kernel,
        out_shape=jax.ShapeDtypeStruct((Mp, Nout), out_dtype),
        grid=grid,
        in_specs=[
            pl.BlockSpec((tm, tk), lambda i, j, k: (i, k)),
            pl.BlockSpec((tk, tn), lambda i, j, k: (k, j)),
            pl.BlockSpec((1, tn), lambda i, j, k: (0, j)),
        ],
        out_specs=pl.BlockSpec((tm, tn), lambda i, j, k: (i, j)),
        scratch_shapes=[pltpu.VMEM((tm, tn), jnp.float32)],
        compiler_params=pltpu.CompilerParams(
            dimension_semantics=("parallel", "parallel", "arbitrary"),
            vmem_limit_bytes=_vmem_limit_bytes(),
        ),
        cost_estimate=pl.CostEstimate(
            flops=int(flops), transcendentals=0, bytes_accessed=int(bytes_accessed)),
    )(x_c, w_t, b2)
    return out[:M] if Mp != M else out


# ----------------------------------------------------------------------------
# Attention kernel: grid = (batch, L-tiles, head-groups)
# ----------------------------------------------------------------------------
def _mha_attn_kernel(q_ref, k_ref, v_ref, o_ref, *w_refs, num_heads, head_dim):
    # q_ref: (HT, TL, Dh) bf16 (softmax scale already folded into the q projection)
    # k_ref, v_ref: (HT, S, Dh) bf16
    # o_ref: (TL, HT*Dh) bf16   (lane-dense output block)
    # w_refs: ((TL, S) f32,) when need_weights else ()
    ht = q_ref.shape[0]

    s = jnp.einsum("hld,hsd->hls", q_ref[...], k_ref[...],
                   preferred_element_type=jnp.float32)            # (HT, TL, S) f32
    s = s - jnp.max(s, axis=-1, keepdims=True)
    e = jnp.exp(s)
    p = e * pl.reciprocal(jnp.sum(e, axis=-1, keepdims=True), approx=True)
    # TODO(synk): dropout / attn_mask / key_padding_mask not implemented (module defaults).
    # TODO(synk): for very long S (esp. v7x 64 MiB VMEM), add flash-style S tiling with
    #             online softmax so the live set becomes independent of S.

    o = jnp.einsum("hls,hsd->hld", p.astype(v_ref.dtype), v_ref[...],
                   preferred_element_type=jnp.float32)            # (HT, TL, Dh) f32
    for h in range(ht):                                           # static unroll; o[h] is a
        o_ref[:, pl.ds(h * head_dim, head_dim)] = o[h].astype(o_ref.dtype)  # major-dim slice

    if w_refs:
        w_ref, = w_refs
        hg = pl.program_id(2)

        @pl.when(hg == 0)
        def _():
            w_ref[...] = jnp.zeros_like(w_ref)

        w_ref[...] += jnp.sum(p, axis=0)

        @pl.when(hg == pl.num_programs(2) - 1)
        def _():
            w_ref[...] *= (1.0 / num_heads)


def _attention_call(q_arr, k_arr, v_arr, q_spec, k_spec, v_spec,
                    L, S, N, H, Dh, TL, HT, need_weights):
    Hg = H // HT
    E = H * Dh
    kernel = functools.partial(_mha_attn_kernel, num_heads=H, head_dim=Dh)

    out_shapes = [jax.ShapeDtypeStruct((N, Hg, L, HT * Dh), _COMPUTE_DTYPE)]
    out_specs = [pl.BlockSpec((None, None, TL, HT * Dh), lambda n, li, h: (n, h, li, 0))]
    if need_weights:
        out_shapes.append(jax.ShapeDtypeStruct((N, L, S), jnp.float32))
        out_specs.append(pl.BlockSpec((None, TL, S), lambda n, li, h: (n, li, 0)))

    flops = 4 * N * H * L * S * Dh
    bytes_accessed = 2 * (N * L * E + 2 * N * S * E + N * L * E)
    if need_weights:
        bytes_accessed += 4 * N * L * S

    res = pl.pallas_call(
        kernel,
        out_shape=tuple(out_shapes),
        grid=(N, L // TL, Hg),
        in_specs=[q_spec, k_spec, v_spec],
        out_specs=tuple(out_specs),
        compiler_params=pltpu.CompilerParams(
            dimension_semantics=("parallel", "parallel",
                                 "arbitrary" if need_weights else "parallel"),
            vmem_limit_bytes=_vmem_limit_bytes(),
        ),
        cost_estimate=pl.CostEstimate(
            flops=int(flops), transcendentals=int(N * H * L * S),
            bytes_accessed=int(bytes_accessed)),
    )(q_arr, k_arr, v_arr)

    if need_weights:
        out4, attn_w = res
    else:
        out4, attn_w = res[0], None

    # (N, Hg, L, HT*Dh) -> (L*N, E): one wrapper-side layout transform (plumbing) so the
    # out-projection sees heads contiguous per (l, n) row.
    out2d = out4.reshape(N, Hg, L, HT, Dh).transpose(2, 0, 1, 3, 4).reshape(L * N, E)
    return out2d, attn_w


# ----------------------------------------------------------------------------
# Forward (qkv_same_embed_dim path of the module)
# ----------------------------------------------------------------------------
def multi_head_attention_forward(query, key, value, params, num_heads, need_weights=True):
    L, N, E = query.shape
    S = key.shape[0]
    H = num_heads
    Dh = E // H
    scale = float(Dh) ** -0.5

    in_w = params["in_proj_weight"]   # (3E, E)
    in_b = params["in_proj_bias"]     # (3E,)

    TL = _pick_tile(L, 128, 8)
    HT = _pick_head_tile(H, Dh, TL, S, _vmem_limit_bytes() // 3)

    if query is key and key is value:
        # Self-attention: ONE fused QKV projection. Fold 1/sqrt(Dh) into the q rows of the
        # fused weight/bias at trace time (free; removes the s*scale pass in the kernel).
        w_fused = jnp.concatenate([in_w[:E] * scale, in_w[E:]], axis=0)
        b_fused = jnp.concatenate([in_b[:E] * scale, in_b[E:]], axis=0)
        qkv = pallas_linear(query.reshape(L * N, E), w_fused, b_fused,
                            out_dtype=_COMPUTE_DTYPE)                     # (L*N, 3E) bf16
        # Single wrapper-side relayout to head-major (layout plumbing): attention blocks
        # arrive as (HT, L, Dh) with zero in-kernel transposes.
        qkv_t = qkv.reshape(L, N, 3, H, Dh).transpose(1, 2, 3, 0, 4)      # (N, 3, H, L, Dh)
        q_spec = pl.BlockSpec((None, None, HT, TL, Dh), lambda n, li, h: (n, 0, h, li, 0))
        k_spec = pl.BlockSpec((None, None, HT, S, Dh), lambda n, li, h: (n, 1, h, 0, 0))
        v_spec = pl.BlockSpec((None, None, HT, S, Dh), lambda n, li, h: (n, 2, h, 0, 0))
        out2d, attn_w = _attention_call(qkv_t, qkv_t, qkv_t, q_spec, k_spec, v_spec,
                                        L, S, N, H, Dh, TL, HT, need_weights)
    else:
        # General path: separate projections (scale folded into the q projection).
        q = pallas_linear(query.reshape(L * N, E), in_w[:E] * scale, in_b[:E] * scale,
                          out_dtype=_COMPUTE_DTYPE)
        k = pallas_linear(key.reshape(S * N, E), in_w[E:2 * E], in_b[E:2 * E],
                          out_dtype=_COMPUTE_DTYPE)
        v = pallas_linear(value.reshape(S * N, E), in_w[2 * E:], in_b[2 * E:],
                          out_dtype=_COMPUTE_DTYPE)
        q_t = q.reshape(L, N, H, Dh).transpose(1, 2, 0, 3)                # (N, H, L, Dh)
        k_t = k.reshape(S, N, H, Dh).transpose(1, 2, 0, 3)                # (N, H, S, Dh)
        v_t = v.reshape(S, N, H, Dh).transpose(1, 2, 0, 3)
        q_spec = pl.BlockSpec((None, HT, TL, Dh), lambda n, li, h: (n, h, li, 0))
        k_spec = pl.BlockSpec((None, HT, S, Dh), lambda n, li, h: (n, h, 0, 0))
        v_spec = pl.BlockSpec((None, HT, S, Dh), lambda n, li, h: (n, h, 0, 0))
        out2d, attn_w = _attention_call(q_t, k_t, v_t, q_spec, k_spec, v_spec,
                                        L, S, N, H, Dh, TL, HT, need_weights)

    out = pallas_linear(out2d, params["out_proj_weight"], params["out_proj_bias"],
                        out_dtype=jnp.float32)
    return out.reshape(L, N, E), attn_w


# ----------------------------------------------------------------------------
# Deterministic parameter init (mirrors module __init__)
# ----------------------------------------------------------------------------
def _xavier_uniform(key, shape):
    fan_out, fan_in = shape
    bound = (6.0 / (fan_in + fan_out)) ** 0.5
    return jax.random.uniform(key, shape, jnp.float32, -bound, bound)


def init_params(key, embed_dim):
    k1, k2 = jax.random.split(key)
    return {
        "in_proj_weight": _xavier_uniform(k1, (3 * embed_dim, embed_dim)),
        "in_proj_bias": jnp.zeros((3 * embed_dim,), jnp.float32),
        "out_proj_weight": _xavier_uniform(k2, (embed_dim, embed_dim)),
        "out_proj_bias": jnp.zeros((embed_dim,), jnp.float32),
    }


# ----------------------------------------------------------------------------
# Pure-JAX reference mirroring the kernel compute path (bf16 matmuls, f32 acc)
# ----------------------------------------------------------------------------
def reference_mha(query, key, value, params, num_heads):
    L, N, E = query.shape
    S = key.shape[0]
    H = num_heads
    Dh = E // H
    scale = float(Dh) ** -0.5
    cd = _COMPUTE_DTYPE

    def lin(x, w, b):
        return jnp.dot(x.astype(cd), w.T.astype(cd),
                       preferred_element_type=jnp.float32) + b

    in_w, in_b = params["in_proj_weight"], params["in_proj_bias"]
    q = lin(query.reshape(L * N, E), in_w[:E] * scale, in_b[:E] * scale)
    k = lin(key.reshape(S * N, E), in_w[E:2 * E], in_b[E:2 * E])
    v = lin(value.reshape(S * N, E), in_w[2 * E:], in_b[2 * E:])
    q = q.reshape(L, N * H, Dh).transpose(1, 0, 2)
    k = k.reshape(S, N * H, Dh).transpose(1, 0, 2)
    v = v.reshape(S, N * H, Dh).transpose(1, 0, 2)
    s = jnp.einsum("bld,bsd->bls", q.astype(cd), k.astype(cd),
                   preferred_element_type=jnp.float32)
    p = jax.nn.softmax(s, axis=-1)
    o = jnp.einsum("bls,bsd->bld", p.astype(cd), v.astype(cd),
                   preferred_element_type=jnp.float32)
    o = o.transpose(1, 0, 2).reshape(L * N, E)
    o = lin(o, params["out_proj_weight"], params["out_proj_bias"]).reshape(L, N, E)
    return o, p.reshape(N, H, L, S).mean(axis=1)


if __name__ == "__main__":
    embed_dim = 32
    num_heads = 4
    seq_len = 8
    batch = 2

    key = jax.random.PRNGKey(0)
    kp, kx, kk, kv = jax.random.split(key, 4)
    params = init_params(kp, embed_dim)

    x = jax.random.normal(kx, (seq_len, batch, embed_dim), jnp.float32)

    # 1) self-attention (fused-QKV fast path)
    out, weights = multi_head_attention_forward(x, x, x, params, num_heads)
    out, weights = jax.block_until_ready((out, weights))
    ref_out, ref_w = reference_mha(x, x, x, params, num_heads)
    assert out.shape == (seq_len, batch, embed_dim)
    assert weights.shape == (batch, seq_len, seq_len)
    assert jnp.allclose(out, ref_out, atol=2e-2, rtol=2e-2), "self-attn output mismatch"
    assert jnp.allclose(weights, ref_w, atol=2e-2, rtol=2e-2), "self-attn weights mismatch"
    assert jnp.allclose(jnp.sum(weights, axis=-1), 1.0, atol=1e-2), "softmax rows != 1"

    # 2) distinct query / key / value (general path)
    k_in = jax.random.normal(kk, (seq_len, batch, embed_dim), jnp.float32)
    v_in = jax.random.normal(kv, (seq_len, batch, embed_dim), jnp.float32)
    out2, w2 = multi_head_attention_forward(x, k_in, v_in, params, num_heads)
    out2, w2 = jax.block_until_ready((out2, w2))
    ref_out2, ref_w2 = reference_mha(x, k_in, v_in, params, num_heads)
    assert jnp.allclose(out2, ref_out2, atol=2e-2, rtol=2e-2), "cross-attn output mismatch"
    assert jnp.allclose(w2, ref_w2, atol=2e-2, rtol=2e-2), "cross-attn weights mismatch"

    # 3) need_weights=False path (weights output gated off)
    out3, w3 = multi_head_attention_forward(x, x, x, params, num_heads, need_weights=False)
    out3 = jax.block_until_ready(out3)
    assert w3 is None
    assert jnp.allclose(out3, ref_out, atol=2e-2, rtol=2e-2), "no-weights output mismatch"

    print("KERNEL_OK")
</pallas_src>

<mosaic_0001>
module attributes {stable_mosaic.version = 11 : i64} {
  func.func @_matmul_bias_kernel(%arg0: i32, %arg1: i32, %arg2: i32, %arg3: memref<16x32xbf16, #tpu.memory_space<vmem>>, %arg4: memref<32x96xbf16, #tpu.memory_space<vmem>>, %arg5: memref<1x96xf32, #tpu.memory_space<vmem>>, %arg6: memref<16x96xbf16, #tpu.memory_space<vmem>>, %arg7: memref<16x96xf32, #tpu.memory_space<vmem>>) attributes {dimension_semantics = [#tpu.dimension_semantics<parallel>, #tpu.dimension_semantics<parallel>, #tpu.dimension_semantics<arbitrary>], iteration_bounds = array<i64: 1, 1, 1>, scalar_prefetch = 0 : i64, scratch_operands = 1 : i64, tpu.core_type = #tpu.core_type<tc>, window_params = [{transform_indices = @transform_0, window_bounds = array<i64: 16, 32>}, {transform_indices = @transform_1, window_bounds = array<i64: 32, 96>}, {transform_indices = @transform_2, window_bounds = array<i64: 1, 96>}, {transform_indices = @transform_3, window_bounds = array<i64: 16, 96>}]} {
    %c0_i32 = arith.constant 0 : i32
    %0 = arith.cmpi eq, %arg2, %c0_i32 : i32
    %1 = arith.extui %0 : i1 to i32
    %c0_i32_0 = arith.constant 0 : i32
    %2 = arith.cmpi ne, %1, %c0_i32_0 : i32
    scf.if %2 {
      %cst_10 = arith.constant 0.000000e+00 : f32
      %12 = vector.broadcast %cst_10 : f32 to vector<16x96xf32>
      %c0_11 = arith.constant 0 : index
      %c0_12 = arith.constant 0 : index
      %13 = vector.load %arg7[%c0_11, %c0_12] : memref<16x96xf32, #tpu.memory_space<vmem>>, vector<16x96xf32>
      tpu.vector_store %arg7[%c0_11, %c0_12], %12 {strides = array<i32>} : memref<16x96xf32, #tpu.memory_space<vmem>>, vector<16x96xf32>,
    } else {
    }
    %c0 = arith.constant 0 : index
    %c0_1 = arith.constant 0 : index
    %3 = vector.load %arg7[%c0, %c0_1] : memref<16x96xf32, #tpu.memory_space<vmem>>, vector<16x96xf32>
    %c0_2 = arith.constant 0 : index
    %c0_3 = arith.constant 0 : index
    %4 = vector.load %arg3[%c0_2, %c0_3] : memref<16x32xbf16, #tpu.memory_space<vmem>>, vector<16x32xbf16>
    %c0_4 = arith.constant 0 : index
    %c0_5 = arith.constant 0 : index
    %5 = vector.load %arg4[%c0_4, %c0_5] : memref<32x96xbf16, #tpu.memory_space<vmem>>, vector<32x96xbf16>
    %cst = arith.constant dense<0.000000e+00> : vector<16x96xf32>
    %6 = tpu.matmul %4, %5, %cst {dimension_numbers = #tpu.dot_dimension_numbers<[1], [0], [0], [1], [0, 0, 1, 1], [], []>} : vector<16x32xbf16>, vector<32x96xbf16>, vector<16x96xf32> -> vector<16x96xf32>
    %7 = arith.addf %3, %6 : vector<16x96xf32>
    %c0_6 = arith.constant 0 : index
    %c0_7 = arith.constant 0 : index
    %8 = vector.load %arg7[%c0_6, %c0_7] : memref<16x96xf32, #tpu.memory_space<vmem>>, vector<16x96xf32>
    tpu.vector_store %arg7[%c0_6, %c0_7], %7 {strides = array<i32>} : memref<16x96xf32, #tpu.memory_space<vmem>>, vector<16x96xf32>,
    %c0_i32_8 = arith.constant 0 : i32
    %9 = arith.cmpi eq, %arg2, %c0_i32_8 : i32
    %10 = arith.extui %9 : i1 to i32
    %c0_i32_9 = arith.constant 0 : i32
    %11 = arith.cmpi ne, %10, %c0_i32_9 : i32
    scf.if %11 {
      %c0_10 = arith.constant 0 : index
      %c0_11 = arith.constant 0 : index
      %12 = vector.load %arg7[%c0_10, %c0_11] : memref<16x96xf32, #tpu.memory_space<vmem>>, vector<16x96xf32>
      %c0_12 = arith.constant 0 : index
      %c0_13 = arith.constant 0 : index
      %13 = vector.load %arg5[%c0_12, %c0_13] : memref<1x96xf32, #tpu.memory_space<vmem>>, vector<1x96xf32>
      %14 = vector.broadcast %13 : vector<1x96xf32> to vector<16x96xf32>
      %15 = arith.addf %12, %14 : vector<16x96xf32>
      %16 = arith.truncf %15 : vector<16x96xf32> to vector<16x96xbf16>
      %c0_14 = arith.constant 0 : index
      %c0_15 = arith.constant 0 : index
      %17 = vector.load %arg6[%c0_14, %c0_15] : memref<16x96xbf16, #tpu.memory_space<vmem>>, vector<16x96xbf16>
      tpu.vector_store %arg6[%c0_14, %c0_15], %16 {strides = array<i32>} : memref<16x96xbf16, #tpu.memory_space<vmem>>, vector<16x96xbf16>,
    } else {
    }
    return
  }
  func.func @transform_0(%arg0: i32, %arg1: i32, %arg2: i32) -> (i32, i32) {
    %c0_i32 = arith.constant 0 : i32
    return %arg0, %arg2 : i32, i32
  }
  func.func @transform_1(%arg0: i32, %arg1: i32, %arg2: i32) -> (i32, i32) {
    %c0_i32 = arith.constant 0 : i32
    return %arg2, %arg1 : i32, i32
  }
  func.func @transform_2(%arg0: i32, %arg1: i32, %arg2: i32) -> (i32, i32) {
    %c0_i32 = arith.constant 0 : i32
    %c0_i32_0 = arith.constant 0 : i32
    return %c0_i32, %arg1 : i32, i32
  }
  func.func @transform_3(%arg0: i32, %arg1: i32, %arg2: i32) -> (i32, i32) {
    %c0_i32 = arith.constant 0 : i32
    return %arg0, %arg1 : i32, i32
  }
}

</mosaic_0001>

<bundles_post_ra>
// kernel: tpu_custom_call.1
= control target key start
LH: loop header
LB: loop body
LE: loop exit
PB: predicated region body
PF: predicated region fallthrough
CT: control target
= control target key end

     0   :  { %8 = vsyncpa [#allocation4], 0  ;;  %s317_s0 = inlined_call_operand.hbm [shape: bf16[16,32], index: 0, kind: input, shape index: {}]   ;;  %s318_s1 = inlined_call_operand.hbm [shape: bf16[32,96], index: 1, kind: input, shape index: {}]   ;;  %s319_s2 = inlined_call_operand.vmem [shape: f32[1,96], index: 2, kind: input, shape index: {}]   ;;  %s320_s3 = inlined_call_operand.hbm [shape: bf16[16,96], index: 3, kind: output, shape index: {}]  }
   0x1   :  { %9 = vsyncpa [#allocation7], 0 }
   0x2   :  { %10 = vsyncpa [#allocation5], 0  ;;  %s265_s12 = smov [#allocation3]  }
   0x3   :  { %s16_s13 = sshll.u32 %s265_s12, 4  ;;  %s17_s13 = int_to_ptr.vmem [resolvable:$true] %s16_s13 }
   0x4   :  { %s207_s14 = scalar_lea.vmem %s17_s13, 128  ;;  %p212_p1 = scmp.lt.s32.totalorder %s17_s13, %s17_s13 }
   0x5   :  { %p208_p0 = scmp.ne.s32.totalorder %s17_s13, %s207_s14  ;;  %p213_p2 = scmp.lt.s32.totalorder %s207_s14, %s207_s14 }
   0x7   :  { %p214_p3 = por %p213_p2, %p212_p1 }
   0x9   :  { %p215_p4 = pnand %p214_p3, %p208_p0 }
   0xb   :  { %218 = shalt.err (!%p215_p4)
}
   0xc   :  { %s266_s15 = smov 64   ;;  %s267_s16 = smov 4  }
   0xd   :  { %22 = dma.hbm_to_vmem [thread:$0]  %s317_s0, 128, %s17_s13, [#allocation4], %s266_s15, %s266_s15, %s267_s16  }
   0xe   :  { %s268_s19 = smov [#allocation6]  }
   0xf   :  { %s28_s20 = sshll.u32 %s268_s19, 4  ;;  %s29_s20 = int_to_ptr.vmem [resolvable:$true] %s28_s20 }
  0x10   :  { %s227_s21 = scalar_lea.vmem %s29_s20, 256  ;;  %p232_p6 = scmp.lt.s32.totalorder %s29_s20, %s29_s20 }
  0x11   :  { %p228_p5 = scmp.ne.s32.totalorder %s29_s20, %s227_s21  ;;  %p233_p7 = scmp.lt.s32.totalorder %s227_s21, %s227_s21 }
  0x13   :  { %p234_p8 = por %p233_p7, %p232_p6 }
  0x15   :  { %p235_p9 = pnand %p234_p8, %p228_p5 }
  0x17   :  { %238 = shalt.err (!%p235_p9)
}
  0x18   :  { %34 = dma.hbm_to_vmem [thread:$0]  %s318_s1, 256, %s29_s20, [#allocation7], %s266_s15, %s266_s15, %s267_s16  }
  0x19   :  { %259 = dma.done.wait [#allocation4], 128  }
  0x1a   :  { %260 = vsyncadd [#allocation4], 4294967168 }
  0x1b   :  { %261 = dma.done.wait [#allocation7], 256  }
  0x1c   :  { %262 = vsyncadd [#allocation7], 4294967040  ;;  %vm48_vm0 = vcmask 785408   ;;  %v269_v0 = vmov 0.0   ;;  %vm270_vm1 = vmmov 0   ;;  %v196_v1 = vld [vmem:[#allocation6 + $0x8] sm:$0xff]  }
  0x1d   :  { %49 = vst.msk [vmem:[#allocation2] sm:$0xff] %vm48_vm0, %v269_v0  ;;  %50 = vst.msk [vmem:[#allocation2 + $0x8] sm:$0xff] %vm48_vm0, %v269_v0  ;;  %181 = vmatprep.subr.bf16.mxu0 %v269_v0  ;;  %185 = vmatprep.mubr.msk.bf16.mxu0 %vm270_vm1, %v269_v0  ;;  %v197_v2 = vld [vmem:[#allocation6] sm:$0xff]   ;;  %v198_v3 = vld [vmem:[#allocation3] sm:$0xff]   ;;  %vm76_vm2 = vcmask 261120   ;;  %vm148_vm3 = vcmask 781312  }
  0x1e   :  { %182 = vmatpush3.bf16.msra.mxu0 %v196_v1  ;;  %v173_v12 = vld [vmem:[%s319_s2] ss:$0 sm:$0xff]  ;;  %s271_s24 = smov [#allocation8]  }
  0x1f   :  { %183 = vmatprep.subr.bf16.mxu0 %v269_v0  ;;  %s156_s25 = sshll.u32 %s271_s24, 4  ;;  %s157_s25 = int_to_ptr.vmem [resolvable:$true] %s156_s25 }
  0x20   :  { %s239_s26 = scalar_lea.vmem %s157_s25, 128  ;;  %p244_p11 = scmp.lt.s32.totalorder %s157_s25, %s157_s25 }
  0x21   :  { %p240_p10 = scmp.ne.s32.totalorder %s157_s25, %s239_s26  ;;  %p245_p12 = scmp.lt.s32.totalorder %s239_s26, %s239_s26 }
  0x22   :  { %184 = vmatpush3.bf16.msra.mxu0 %v197_v2 }
  0x23   :  { %p246_p13 = por %p245_p12, %p244_p11 }
  0x24   :  { %v51_v4 = vld [vmem:[#allocation2] sm:$0xff]  ;;  %v52_v8 = vld [vmem:[#allocation2 + $0x8] sm:$0xff] }
  0x25   :  { %186 = vmatmul.mubr.msk.bf16.vlgmr.msra.gmra.mxu0 %vm76_vm2, %v198_v3  ;;  %p247_p0 = pnand %p246_p13, %p240_p10 }
  0xe5   :  { %v114_v5 = vpop.f32.mrf.mxu0 }
  0xe6   :  { %v121_v6 = vadd.f32 %v114_v5, %v51_v4 }
  0xe7   :  { %v187_v7 = vpop.f32.mrf.mxu0 }
  0xe8   :  { %124 = vst.msk [vmem:[#allocation2] sm:$0xff] %vm48_vm0, %v121_v6 }
  0xe9   :  { %v117_v9 = vpop.f32.mrf.mxu0 }
  0xea   :  { %v122_v10 = vadd.f32 %v117_v9, %v52_v8 }
  0xeb   :  { %v188_v11 = vpop.f32.mrf.mxu0 }
  0xec   :  { %125 = vst.msk [vmem:[#allocation2 + $0x8] sm:$0xff] %vm48_vm0, %v122_v10 }
  0xef   :  { %v129_v13 = vld [vmem:[#allocation2] sm:$0xff] }
  0xf0   :  { %v138_v14 = vadd.f32 %v173_v12, %v129_v13 }
  0xf2   :  { %v176_v15 = vpack.c.bf16 %v138_v14, %v138_v14 }
  0xf3   :  { %v130_v16 = vld [vmem:[#allocation2 + $0x8] sm:$0xff] }
  0xf4   :  { %v139_v17 = vadd.f32 %v173_v12, %v130_v16  ;;  %149 = vst.msk [vmem:[#allocation8] sm:$0xf] %vm148_vm3, %v176_v15 }
  0xf6   :  { %v177_v18 = vpack.c.bf16 %v139_v17, %v139_v17 }
  0xf8   :  { %150 = vst.msk [vmem:[#allocation8 + $0x4] sm:$0xf] %vm148_vm3, %v177_v18 }
  0xf9   :  { %250 = shalt.err (!%p247_p0)
}
  0xfa   :  { %162 = dma.vmem_to_hbm [thread:$0]  %s157_s25, 128, %s320_s3, [#allocation5], %s266_s15, %s266_s15, %s267_s16  }
  0xfb   :  { %263 = dma.done.wait [#allocation5], 128  }
  0xfc   :  { %264 = vsyncadd [#allocation5], 4294967168 }
  0xfd   :  { %166 = vsyncpa [#allocation4], 1 }
  0xfe   :  { %167 = vsyncpa [#allocation7], 1 }
  0xff   :  { %168 = vsyncpa [#allocation5], 1 }

</bundles_post_ra>
